<compile_context>
chip_gen: v6e
topology: v6e:2x2x1
jax: 0.10.0
libtpu: 0.0.40
codegen_flags: <defaults>
</compile_context>

<pallas_src>
from functools import partial

import jax
import jax.numpy as jnp
from jax.experimental import pallas as pl
from jax.experimental.pallas import tpu as pltpu


OUT_WIDTH = 128  # lane-dense output width (>= n_actions + 1)


def _round_up(x, m):
    return (x + m - 1) // m * m


def actor_critic_kernel(x_ref, w1b1_ref, w2b2_ref, out_ref, *, d, h2, n_actions):
    """Fused actor+critic forward for one row tile.

    x_ref    : [Bt, D]   f32
    w1b1_ref : [pad8(D+1), 2H]   rows 0..D-1 = [wa1|wc1], row D = [ba1|bc1] (bf16)
    w2b2_ref : [pad8(2H+1), 128] rows 0..2H-1 = blockdiag(wa2, wc2), row 2H = bias (bf16)
    out_ref  : [Bt, 128] f32     lanes 0..n_actions-1 = probs, lane n_actions = value
    """
    x = x_ref[...]                                      # [Bt, D] f32
    w1 = w1b1_ref[0:d, :]                               # [D, 2H] bf16
    b1 = w1b1_ref[d:d + 1, :].astype(jnp.float32)       # [1, 2H] f32
    w2 = w2b2_ref[0:h2, :]                              # [2H, 128] bf16
    b2 = w2b2_ref[h2:h2 + 1, :].astype(jnp.float32)     # [1, 128] f32

    # ---- fused layer 1: both branches in one MXU matmul (bf16 in, f32 acc) ----
    h = jnp.dot(x.astype(w1.dtype), w1, preferred_element_type=jnp.float32) + b1
    h = jnp.maximum(h, 0.0)                             # [Bt, 2H] f32

    # ---- fused layer 2: block-diagonal matmul -> [logits | value | 0...] ----
    z = jnp.dot(h.astype(w2.dtype), w2, preferred_element_type=jnp.float32) + b2

    lane = jax.lax.broadcasted_iota(jnp.int32, z.shape, 1)
    is_logit = lane < n_actions
    is_value = lane == n_actions

    # masked softmax over the logit lanes only (numerically stable, f32)
    masked = jnp.where(is_logit, z, jnp.float32(-1e30))
    m = jnp.max(masked, axis=-1, keepdims=True)
    e = jnp.exp(masked - m)                             # non-logit lanes -> exact 0
    denom = jnp.sum(e, axis=-1, keepdims=True)
    # EUP approximate reciprocal + one Newton-Raphson step (~f32 accuracy, VPU-free)
    r = pl.reciprocal(denom, approx=True)
    r = r * (2.0 - denom * r)
    probs = e * r

    # lane-dense output: probs + value lane (probs is exactly 0 at the value lane)
    out_ref[...] = probs + jnp.where(is_value, z, 0.0)


def pack_params(p, out_width=OUT_WIDTH, weights_dtype=jnp.bfloat16):
    """Pack 8 PyTorch-style tensors into 2 bf16 kernel operands (once at init)."""
    wa1, ba1, wa2, ba2 = p["wa1"], p["ba1"], p["wa2"], p["ba2"]
    wc1, bc1, wc2, bc2 = p["wc1"], p["bc1"], p["wc2"], p["bc2"]
    d, h = wa1.shape
    n_actions = wa2.shape[1]
    assert n_actions + 1 <= out_width

    # layer 1: [D+1, 2H] (last used row = bias), sublane-padded to multiple of 8
    w1 = jnp.concatenate([wa1, wc1], axis=1)                 # [D, 2H]
    b1 = jnp.concatenate([ba1, bc1], axis=1)                 # [1, 2H]
    w1b1 = jnp.concatenate([w1, b1], axis=0)                 # [D+1, 2H]
    w1b1 = jnp.pad(w1b1, ((0, _round_up(d + 1, 8) - (d + 1)), (0, 0)))

    # layer 2: block-diagonal, lane-padded to out_width, bias row, sublane-padded
    w2 = jnp.zeros((2 * h, out_width), jnp.float32)
    w2 = w2.at[:h, :n_actions].set(wa2)                      # actor logits
    w2 = w2.at[h:, n_actions:n_actions + 1].set(wc2)         # critic value
    b2 = jnp.zeros((1, out_width), jnp.float32)
    b2 = b2.at[:, :n_actions].set(ba2)
    b2 = b2.at[:, n_actions:n_actions + 1].set(bc2)
    w2b2 = jnp.concatenate([w2, b2], axis=0)                 # [2H+1, out_width]
    w2b2 = jnp.pad(w2b2, ((0, _round_up(2 * h + 1, 8) - (2 * h + 1)), (0, 0)))

    return dict(w1b1=w1b1.astype(weights_dtype),
                w2b2=w2b2.astype(weights_dtype),
                d=d, h2=2 * h, n_actions=n_actions, out_width=out_width)


def actor_critic_forward(states, packed, *, block_rows=128):
    """states: [..., D] f32. packed: output of pack_params. Returns (probs, value)."""
    lead = states.shape[:-1]
    d = states.shape[-1]
    assert d == packed["d"]
    n_actions = packed["n_actions"]
    h2 = packed["h2"]
    out_width = packed["out_width"]

    x = states.reshape(-1, d).astype(jnp.float32)
    n = x.shape[0]
    block_rows = min(block_rows, _round_up(n, 8))            # multiple of 8
    n_pad = _round_up(n, block_rows)
    if n_pad != n:
        x = jnp.pad(x, ((0, n_pad - n), (0, 0)))
    grid = (n_pad // block_rows,)

    kernel = partial(actor_critic_kernel, d=d, h2=h2, n_actions=n_actions)

    out = pl.pallas_call(
        kernel,
        out_shape=jax.ShapeDtypeStruct((n_pad, out_width), jnp.float32),
        grid=grid,
        in_specs=[
            # per-step row tile of states
            pl.BlockSpec((block_rows, d), lambda i: (i, 0)),
            # packed weights: constant block index -> DMA'd once, VMEM-resident
            pl.BlockSpec(packed["w1b1"].shape, lambda i: (0, 0)),
            pl.BlockSpec(packed["w2b2"].shape, lambda i: (0, 0)),
        ],
        out_specs=pl.BlockSpec((block_rows, out_width), lambda i: (i, 0)),
        compiler_params=pltpu.CompilerParams(
            dimension_semantics=("parallel",)),   # shards rows across v7x's 2 TCs
    )(x, packed["w1b1"], packed["w2b2"])

    probs = out[:n, :n_actions].reshape(*lead, n_actions)
    value = out[:n, n_actions:n_actions + 1].reshape(*lead, 1)
    return probs, value


def init_params(key, input_dim, n_actions, hidden=128):
    """Deterministic PyTorch-style init: U(-1/sqrt(fan_in), 1/sqrt(fan_in))."""
    ks = jax.random.split(key, 8)

    def lin(kw, kb, fan_in, fan_out):
        bound = 1.0 / jnp.sqrt(jnp.float32(fan_in))
        w = jax.random.uniform(kw, (fan_in, fan_out), jnp.float32, -bound, bound)
        b = jax.random.uniform(kb, (1, fan_out), jnp.float32, -bound, bound)
        return w, b

    wa1, ba1 = lin(ks[0], ks[1], input_dim, hidden)
    wa2, ba2 = lin(ks[2], ks[3], hidden, n_actions)
    wc1, bc1 = lin(ks[4], ks[5], input_dim, hidden)
    wc2, bc2 = lin(ks[6], ks[7], hidden, 1)
    return dict(wa1=wa1, ba1=ba1, wa2=wa2, ba2=ba2,
                wc1=wc1, bc1=bc1, wc2=wc2, bc2=bc2)


def reference_forward(states, p, weights_dtype=jnp.bfloat16):
    """Pure-JAX reference mirroring the kernel's bf16 operand rounding (f32 acc)."""
    def q(a):
        return a.astype(weights_dtype).astype(jnp.float32)
    x = q(states.reshape(-1, states.shape[-1]))
    h_a = jnp.maximum(x @ q(p["wa1"]) + q(p["ba1"]), 0.0)
    probs = jax.nn.softmax(q(h_a) @ q(p["wa2"]) + q(p["ba2"]), axis=1)
    h_c = jnp.maximum(x @ q(p["wc1"]) + q(p["bc1"]), 0.0)
    value = q(h_c) @ q(p["wc2"]) + q(p["bc2"])
    return probs, value


if __name__ == "__main__":
    key = jax.random.PRNGKey(0)
    k_state, k_params = jax.random.split(key)

    INPUT_DIM, N_ACTIONS = 32, 8
    T, B_ENV = 32, 8   # small rollout: 256 states total, gridded in 128-row tiles
    states = jax.random.normal(k_state, (T, B_ENV, INPUT_DIM), jnp.float32)

    params = init_params(k_params, INPUT_DIM, N_ACTIONS)
    packed = pack_params(params)   # one-time packing (bf16, sublane-padded)

    probs, value = actor_critic_forward(states, packed, block_rows=128)
    jax.block_until_ready((probs, value))

    assert probs.shape == (T, B_ENV, N_ACTIONS)
    assert value.shape == (T, B_ENV, 1)

    # sanity check against a pure-JAX reference with matching bf16 weight rounding
    ref_probs, ref_value = reference_forward(states, params)
    p2 = probs.reshape(-1, N_ACTIONS)
    v2 = value.reshape(-1, 1)
    assert jnp.allclose(p2, ref_probs, atol=1e-4, rtol=1e-4)
    assert jnp.allclose(v2, ref_value, atol=1e-4, rtol=1e-4)
    assert jnp.allclose(jnp.sum(p2, axis=1), 1.0, atol=1e-5)

    print("KERNEL_OK")
</pallas_src>

<mosaic_0001>
module attributes {stable_mosaic.version = 11 : i64} {
  func.func @actor_critic_kernel(%arg0: i32, %arg1: memref<128x32xf32, #tpu.memory_space<vmem>>, %arg2: memref<40x256xbf16, #tpu.memory_space<vmem>>, %arg3: memref<264x128xbf16, #tpu.memory_space<vmem>>, %arg4: memref<128x128xf32, #tpu.memory_space<vmem>>) attributes {dimension_semantics = [#tpu.dimension_semantics<parallel>], iteration_bounds = array<i64: 2>, scalar_prefetch = 0 : i64, scratch_operands = 0 : i64, tpu.core_type = #tpu.core_type<tc>, window_params = [{transform_indices = @transform_0, window_bounds = array<i64: 128, 32>}, {pipeline_mode = #tpu.pipeline_mode<synchronous>, transform_indices = @transform_1, window_bounds = array<i64: 40, 256>}, {pipeline_mode = #tpu.pipeline_mode<synchronous>, transform_indices = @transform_2, window_bounds = array<i64: 264, 128>}, {transform_indices = @transform_3, window_bounds = array<i64: 128, 128>}]} {
    %c0 = arith.constant 0 : index
    %c0_0 = arith.constant 0 : index
    %0 = vector.load %arg1[%c0, %c0_0] : memref<128x32xf32, #tpu.memory_space<vmem>>, vector<128x32xf32>
    %c0_1 = arith.constant 0 : index
    %c0_2 = arith.constant 0 : index
    %1 = vector.load %arg2[%c0_1, %c0_2] : memref<40x256xbf16, #tpu.memory_space<vmem>>, vector<32x256xbf16>
    %c32 = arith.constant 32 : index
    %c0_3 = arith.constant 0 : index
    %2 = vector.load %arg2[%c32, %c0_3] : memref<40x256xbf16, #tpu.memory_space<vmem>>, vector<1x256xbf16>
    %3 = arith.extf %2 : vector<1x256xbf16> to vector<1x256xf32>
    %c0_4 = arith.constant 0 : index
    %c0_5 = arith.constant 0 : index
    %4 = vector.load %arg3[%c0_4, %c0_5] : memref<264x128xbf16, #tpu.memory_space<vmem>>, vector<256x128xbf16>
    %c256 = arith.constant 256 : index
    %c0_6 = arith.constant 0 : index
    %5 = vector.load %arg3[%c256, %c0_6] : memref<264x128xbf16, #tpu.memory_space<vmem>>, vector<1x128xbf16>
    %6 = arith.extf %5 : vector<1x128xbf16> to vector<1x128xf32>
    %7 = arith.truncf %0 : vector<128x32xf32> to vector<128x32xbf16>
    %cst = arith.constant dense<0.000000e+00> : vector<128x256xf32>
    %8 = tpu.matmul %7, %1, %cst {dimension_numbers = #tpu.dot_dimension_numbers<[1], [0], [0], [1], [0, 0, 1, 1], [], []>} : vector<128x32xbf16>, vector<32x256xbf16>, vector<128x256xf32> -> vector<128x256xf32>
    %9 = vector.broadcast %3 : vector<1x256xf32> to vector<128x256xf32>
    %10 = arith.addf %8, %9 : vector<128x256xf32>
    %cst_7 = arith.constant 0.000000e+00 : f32
    %11 = vector.broadcast %cst_7 : f32 to vector<128x256xf32>
    %12 = arith.maximumf %10, %11 : vector<128x256xf32>
    %13 = arith.truncf %12 : vector<128x256xf32> to vector<128x256xbf16>
    %cst_8 = arith.constant dense<0.000000e+00> : vector<128x128xf32>
    %14 = tpu.matmul %13, %4, %cst_8 {dimension_numbers = #tpu.dot_dimension_numbers<[1], [0], [0], [1], [0, 0, 1, 1], [], []>} : vector<128x256xbf16>, vector<256x128xbf16>, vector<128x128xf32> -> vector<128x128xf32>
    %15 = vector.broadcast %6 : vector<1x128xf32> to vector<128x128xf32>
    %16 = arith.addf %14, %15 : vector<128x128xf32>
    %17 = tpu.iota {dimensions = array<i32: 1>} : vector<128x128xi32>
    %c8_i32 = arith.constant 8 : i32
    %18 = vector.broadcast %c8_i32 : i32 to vector<128x128xi32>
    %19 = arith.cmpi slt, %17, %18 : vector<128x128xi32>
    %c8_i32_9 = arith.constant 8 : i32
    %20 = vector.broadcast %c8_i32_9 : i32 to vector<128x128xi32>
    %21 = arith.cmpi eq, %17, %20 : vector<128x128xi32>
    %cst_10 = arith.constant -1.000000e+30 : f32
    %22 = vector.broadcast %cst_10 : f32 to vector<128x128xf32>
    %23 = arith.select %19, %16, %22 : vector<128x128xi1>, vector<128x128xf32>
    %cst_11 = arith.constant dense<0xFF800000> : vector<128xf32>
    %24 = vector.multi_reduction <maximumf>, %23, %cst_11 [1] : vector<128x128xf32> to vector<128xf32>
    %25 = vector.shape_cast %24 : vector<128xf32> to vector<128x1xf32>
    %26 = vector.broadcast %25 : vector<128x1xf32> to vector<128x128xf32>
    %27 = arith.subf %23, %26 : vector<128x128xf32>
    %28 = math.exp %27 : vector<128x128xf32>
    %cst_12 = arith.constant dense<0.000000e+00> : vector<128xf32>
    %29 = vector.multi_reduction <add>, %28, %cst_12 [1] : vector<128x128xf32> to vector<128xf32>
    %30 = vector.shape_cast %29 : vector<128xf32> to vector<128x1xf32>
    %31 = tpu.reciprocal %30 {approx = true} : vector<128x1xf32> -> vector<128x1xf32>
    %32 = arith.mulf %30, %31 : vector<128x1xf32>
    %cst_13 = arith.constant 2.000000e+00 : f32
    %33 = vector.broadcast %cst_13 : f32 to vector<128x1xf32>
    %34 = arith.subf %33, %32 : vector<128x1xf32>
    %35 = arith.mulf %31, %34 : vector<128x1xf32>
    %36 = vector.broadcast %35 : vector<128x1xf32> to vector<128x128xf32>
    %37 = arith.mulf %28, %36 : vector<128x128xf32>
    %cst_14 = arith.constant 0.000000e+00 : f32
    %38 = vector.broadcast %cst_14 : f32 to vector<128x128xf32>
    %39 = arith.select %21, %16, %38 : vector<128x128xi1>, vector<128x128xf32>
    %40 = arith.addf %37, %39 : vector<128x128xf32>
    %c0_15 = arith.constant 0 : index
    %c0_16 = arith.constant 0 : index
    %41 = vector.load %arg4[%c0_15, %c0_16] : memref<128x128xf32, #tpu.memory_space<vmem>>, vector<128x128xf32>
    tpu.vector_store %arg4[%c0_15, %c0_16], %40 {strides = array<i32>} : memref<128x128xf32, #tpu.memory_space<vmem>>, vector<128x128xf32>,
    return
  }
  func.func @transform_0(%arg0: i32) -> (i32, i32) {
    %c0_i32 = arith.constant 0 : i32
    %c0_i32_0 = arith.constant 0 : i32
    return %arg0, %c0_i32 : i32, i32
  }
  func.func @transform_1(%arg0: i32) -> (i32, i32) {
    %c0_i32 = arith.constant 0 : i32
    %c0_i32_0 = arith.constant 0 : i32
    %c0_i32_1 = arith.constant 0 : i32
    return %c0_i32, %c0_i32_0 : i32, i32
  }
  func.func @transform_2(%arg0: i32) -> (i32, i32) {
    %c0_i32 = arith.constant 0 : i32
    %c0_i32_0 = arith.constant 0 : i32
    %c0_i32_1 = arith.constant 0 : i32
    return %c0_i32, %c0_i32_0 : i32, i32
  }
  func.func @transform_3(%arg0: i32) -> (i32, i32) {
    %c0_i32 = arith.constant 0 : i32
    %c0_i32_0 = arith.constant 0 : i32
    return %arg0, %c0_i32 : i32, i32
  }
}

</mosaic_0001>

<bundles_post_ra>
// kernel: tpu_custom_call.1
= control target key start
LH: loop header
LB: loop body
LE: loop exit
PB: predicated region body
PF: predicated region fallthrough
CT: control target
= control target key end

     0   :  { %8 = vsyncpa [#allocation3], 0  ;;  %s1849_s0 = inlined_call_operand.vmem [shape: f32[256,32], index: 0, kind: input, shape index: {}]   ;;  %s1850_s1 = inlined_call_operand.vmem [shape: bf16[40,256], index: 1, kind: input, shape index: {}]   ;;  %s1851_s2 = inlined_call_operand.vmem [shape: bf16[264,128], index: 2, kind: input, shape index: {}]   ;;  %s1852_s3 = inlined_call_operand.hbm [shape: f32[256,128], index: 3, kind: output, shape index: {}]  }
   0x1   :  { %10 = vsyncpa [#allocation3 + $0x1], 0  ;;  %s1320_s12 = smov 0   ;;  %s1322_s13 = smov 0  }
   0x2   :  { %s1324_s14 = smov 0   ;;  %s1326_s15 = smov 0  }
   0x3 LB: > { %s1341_s16 = sadd.s32 4294967295, %s1294_s15   ;;  %s985_s17 = sadd.s32 4294967294, %s1294_s15   ;;  %s1294_s15 = sphi %s1326_s15, %s1858_s15   ;;  %s1290_s14 = sphi %s1324_s14, %s1857_s14   ;;  %s1286_s13 = sphi %s1322_s13, %s1856_s13   ;;  %s1282_s12 = sphi %s1320_s12, %s1855_s12  }
   0x4   : > { %s1345_s18 = sadd.s32 1, %s1294_s15   ;;  %s91_s19 = sadd.s32 1, %s1290_s14 }
   0x5   : > { %s88_s20 = ssub.s32 %s1294_s15, %s1345_s18  ;;  %p101_p0 = scmp.ne.s32.totalorder %s1290_s14, %s1286_s13 }
   0x6   : > { %p89_p1 = scmp.eq.s32.totalorder %s88_s20, 0  ;;  %p102_p2 = scmp.eq.s32.totalorder %s1341_s16, 1 }
   0x7   : > { %p107_p3 = scmp.ne.s32.totalorder %s1286_s13, %s1282_s12  ;;  %p108_p4 = scmp.eq.s32.totalorder %s985_s17, 1 }
   0x8   : > { %s1356_s21 = scalar_select %p89_p1, %s1290_s14, %s91_s19  }
   0x9   : > { %p1358_p5 = por %p102_p2, %p101_p0  ;;  %p1362_p6 = por %p108_p4, %p107_p3 }
   0xa   : > { %p988_p7 = scmp.ge.s32.totalorder %s1294_s15, 1  ;;  %p141_p8 = scmp.lt.s32.totalorder %s1294_s15, 3 }
   0xc   : > { %p142_p9 = pnand %p988_p7, %p141_p8 }
   0xd   : > { %s990_s26 = sshll.u32 (!%p142_p9), %s1341_s16, 4  ;;  %s1025_s19 = sshll.u32 (!%p142_p9), %s1341_s16, 11 }
   0xe   : > { %145 = sbr.rel (%p142_p9) target bundleno = 826 (0x33a), region = 32  ;;  %p166_p10 = scmp.lt.s32.totalorder (!%p142_p9), %s990_s26, 31 }
   0xf   : > { %s1801_s27 = scalar_lea.hbm (!%p142_p9), %s1852_s3, %s1025_s19  ;;  %s1297_s28 = smov (!%p142_p9), [#allocation2]  }
  0x10   : > { %s1238_s29 = sshll.u32 (!%p142_p9), %s1297_s28, 4  ;;  %s1239_s29 = int_to_ptr.vmem [resolvable:$false] %s1238_s29 }
  0x11   : > { %s1240_s30 = scalar_lea.vmem (!%p142_p9), %s1239_s29, 4096 }
  0x13   : > { %v1148_v0 = vld [vmem:[%s1850_s1 + $0x14] ss:$8 sps:$4 sm:$0xff]   ;;  %v1150_v1 = vld [vmem:[%s1850_s1 + $0x10] ss:$8 sps:$4 sm:$0xff]   ;;  %v1296_v2 = vmov 0   ;;  %s1860_s26 = smov (!%p166_p10, %s990_s26), 31  ;;  %v238_v45 = vlaneseq }
  0x14   : > { %323 = vmatprep.mubr.bf16.mxu0 %v1296_v2  ;;  %303 = vmatprep.subr.bf16.mxu0 %v1148_v0  ;;  %v1151_v3 = vld [vmem:[%s1850_s1 + $0x4] ss:$8 sps:$4 sm:$0xff]   ;;  %v1153_v4 = vld [vmem:[%s1850_s1] ss:$8 sps:$4 sm:$0xff]   ;;  %v1154_v5 = vld [vmem:[%s1851_s2 + $0x78] sm:$0xff]   ;;  %s991_s10 = sshll.u32 %s1860_s26, 3 }
  0x15   : > { %304 = vmatpush1.bf16.msra.mxu0 %v1150_v1  ;;  %v1155_v6 = vld [vmem:[%s1851_s2 + $0x38] sm:$0xff]   ;;  %v1156_v7 = vld [vmem:[%s1851_s2 + $0x70] sm:$0xff]   ;;  %1090 = vmatprep.subr.bf16.mxu1 %v1154_v5  ;;  %s1394_s24 = scalar_lea.vmem %s1849_s0, %s991_s10  ;;  %vm266_vm0 = vcmask 261120   ;;  %v1158_v14 = vld [vmem:[%s1851_s2 + $0x68] sm:$0xff]   ;;  %v239_v46 = vshrl.u32 %v238_v45, 7  ;;  %s162_s10 = sand.u32 1, %s1286_s13  }
  0x16   : > { %305 = vmatprep.subr.bf16.mxu0 %v1151_v3  ;;  %1098 = vmatpush3.bf16.msra.mxu1 %v1155_v6  ;;  %v173_v8 = vld [vmem:[%s1394_s24] sm:$0xff]  ;;  %v174_v9 = vld [vmem:[%s1394_s24 + $0x8] sm:$0xff]  ;;  %v1157_v11 = vld [vmem:[%s1851_s2 + $0x30] sm:$0xff]   ;;  %s989_s11 = sshll.u32 %s162_s10, 7 }
  0x17   : > { %1091 = vmatprep.subr.bf16.mxu1 %v1156_v7  ;;  %v230_v10 = vpack.c.bf16 %v174_v9, %v173_v8  ;;  %v175_v12 = vld [vmem:[%s1394_s24 + $0x10] sm:$0xff]  ;;  %v176_v13 = vld [vmem:[%s1394_s24 + $0x18] sm:$0xff]  ;;  %v1159_v15 = vld [vmem:[%s1851_s2 + $0x28] sm:$0xff]   ;;  %v1470_v50 = vsub.s32 0, %v239_v46  ;;  %s1750_s17 = scalar_lea.vmem [#allocation2], %s989_s11 }
  0x18   : > { %v231_v16 = vpack.c.bf16 %v176_v13, %v175_v12  ;;  %v1160_v17 = vld [vmem:[%s1851_s2 + $0x60] sm:$0xff]   ;;  %v178_v19 = vld [vmem:[%s1394_s24 + $0x28] sm:$0xff]  ;;  %v1162_v21 = vld [vmem:[%s1851_s2 + $0x58] sm:$0xff]   ;;  %s923_s20 = sshll.u32 %s1750_s17, 4  ;;  %s1803_s20 = int_to_ptr.vmem [resolvable:$true] %s923_s20 }
  0x19   : > { %306 = vmatpush1.bf16.msra.mxu0 %v1153_v4  ;;  %v177_v18 = vld [vmem:[%s1394_s24 + $0x20] sm:$0xff]  ;;  %v1163_v23 = vld [vmem:[%s1851_s2 + $0x18] sm:$0xff]   ;;  %v179_v24 = vld [vmem:[%s1394_s24 + $0x30] sm:$0xff]  ;;  %s1234_s16 = scalar_lea.vmem %s1803_s20, 2048  ;;  %p1241_p0 = scmp.lt.s32.totalorder %s1803_s20, %s1239_s29 }
  0x1a   : > { %1026 = vmatprep.subr.bf16.mxu0 %v1154_v5  ;;  %1099 = vmatpush3.bf16.msra.mxu1 %v1157_v11  ;;  %v1161_v20 = vld [vmem:[%s1851_s2 + $0x20] sm:$0xff]   ;;  %v232_v22 = vpack.c.bf16 %v178_v19, %v177_v18  ;;  %v180_v25 = vld [vmem:[%s1394_s24 + $0x38] sm:$0xff]  ;;  %v182_v28 = vld [vmem:[%s1394_s24 + $0x48] sm:$0xff]  ;;  %p1235_p11 = scmp.ne.s32.totalorder %s1803_s20, %s1234_s16  ;;  %p1242_p1 = scmp.lt.s32.totalorder %s1240_s30, %s1234_s16 }
  0x1b   : > { %1092 = vmatprep.subr.bf16.mxu1 %v1158_v14  ;;  %v233_v26 = vpack.c.bf16 %v180_v25, %v179_v24  ;;  %v181_v27 = vld [vmem:[%s1394_s24 + $0x40] sm:$0xff]  ;;  %v183_v30 = vld [vmem:[%s1394_s24 + $0x50] sm:$0xff]  ;;  %v184_v31 = vld [vmem:[%s1394_s24 + $0x58] sm:$0xff] }
  0x1c   : > { %996 = vmatmul.mubr.msk.bf16.vlgmr.msra.gmra.mxu0 %vm266_vm0, %v230_v10  ;;  %v234_v29 = vpack.c.bf16 %v182_v28, %v181_v27  ;;  %v235_v32 = vpack.c.bf16 %v184_v31, %v183_v30  ;;  %v185_v33 = vld [vmem:[%s1394_s24 + $0x60] sm:$0xff]  ;;  %v186_v34 = vld [vmem:[%s1394_s24 + $0x68] sm:$0xff]  ;;  %v187_v36 = vld [vmem:[%s1394_s24 + $0x70] sm:$0xff]  ;;  %p1236_p12 = pnand %p1235_p11, %p1358_p5  ;;  %p1243_p2 = por %p1242_p1, %p1241_p0 }
  0x1d   : > { %333 = vmatprep.mubr.bf16.mxu0 %v1296_v2  ;;  %1027 = vmatpush3.bf16.msra.mxu0 %v1155_v6  ;;  %v236_v35 = vpack.c.bf16 %v186_v34, %v185_v33  ;;  %v188_v37 = vld [vmem:[%s1394_s24 + $0x78] sm:$0xff]  ;;  %v1164_v39 = vld [vmem:[%s1851_s2 + $0x50] sm:$0xff]   ;;  %v1166_v41 = vld [vmem:[%s1851_s2 + $0x48] sm:$0xff]   ;;  %s1809_s24 = scalar_lea.sflag [#allocation3], %s162_s10 }
  0x1e   : > { %1028 = vmatprep.subr.bf16.mxu0 %v1156_v7  ;;  %1100 = vmatpush3.bf16.msra.mxu1 %v1159_v15  ;;  %v237_v38 = vpack.c.bf16 %v188_v37, %v187_v36  ;;  %v1165_v40 = vld [vmem:[%s1851_s2 + $0x10] sm:$0xff]   ;;  %v1167_v42 = vld [vmem:[%s1851_s2 + $0x8] sm:$0xff]   ;;  %v1168_v43 = vld [vmem:[%s1851_s2 + $0x40] sm:$0xff]   ;;  %p1237_p13 = pneg %p1236_p12 }
  0x1f   : > { %1093 = vmatprep.subr.bf16.mxu1 %v1160_v17  ;;  %v1169_v44 = vld [vmem:[%s1851_s2] sm:$0xff]  }
  0x20   : > { %v193_v47 = vld [vmem:[%s1850_s1 + $0x20] sm:$0x11]  ;;  %p1244_p3 = pnand %p1243_p2, %p1237_p13 }
  0x21   : > { %1029 = vmatpush3.bf16.msra.mxu0 %v1157_v11  ;;  %v195_v48 = vunpack.c.h.bf16 %v193_v47  ;;  %v194_v49 = vunpack.c.l.bf16 %v193_v47 }
  0x22   : > { %1030 = vmatprep.subr.bf16.mxu0 %v1158_v14  ;;  %1101 = vmatpush3.bf16.msra.mxu1 %v1161_v20 }
  0x23   : > { %1094 = vmatprep.subr.bf16.mxu1 %v1162_v21  ;;  %v1473_v52 = vrot.slane %v195_v48, %v1470_v50  ;;  %v1476_v53 = vrot.slane %v194_v49, %v1470_v50 }
  0x24   : > { %997 = vmatmul.mubr.msk.bf16.gmra.mxu0 %vm266_vm0, %v231_v16 }
  0x25   : > { %343 = vmatprep.mubr.bf16.mxu0 %v1296_v2  ;;  %1031 = vmatpush3.bf16.msra.mxu0 %v1159_v15 }
  0x26   : > { %1032 = vmatprep.subr.bf16.mxu0 %v1160_v17  ;;  %1102 = vmatpush3.bf16.msra.mxu1 %v1163_v23 }
  0x27   : > { %1095 = vmatprep.subr.bf16.mxu1 %v1164_v39 }
  0x29   : > { %1033 = vmatpush3.bf16.msra.mxu0 %v1161_v20 }
  0x2a   : > { %1034 = vmatprep.subr.bf16.mxu0 %v1162_v21  ;;  %1103 = vmatpush3.bf16.msra.mxu1 %v1165_v40 }
  0x2b   : > { %1096 = vmatprep.subr.bf16.mxu1 %v1166_v41 }
  0x2c   : > { %998 = vmatmul.mubr.msk.bf16.gmra.mxu0 %vm266_vm0, %v232_v22 }
  0x2d   : > { %353 = vmatprep.mubr.bf16.mxu0 %v1296_v2  ;;  %1035 = vmatpush3.bf16.msra.mxu0 %v1163_v23 }
  0x2e   : > { %1036 = vmatprep.subr.bf16.mxu0 %v1164_v39  ;;  %1104 = vmatpush3.bf16.msra.mxu1 %v1167_v42 }
  0x2f   : > { %1097 = vmatprep.subr.bf16.mxu1 %v1168_v43 }
  0x31   : > { %1037 = vmatpush3.bf16.msra.mxu0 %v1165_v40 }
  0x32   : > { %1038 = vmatprep.subr.bf16.mxu0 %v1166_v41  ;;  %1105 = vmatpush3.bf16.msra.mxu1 %v1169_v44 }
  0x34   : > { %999 = vmatmul.mubr.msk.bf16.gmra.mxu0 %vm266_vm0, %v233_v26 }
  0x35   : > { %363 = vmatprep.mubr.bf16.mxu0 %v1296_v2  ;;  %1039 = vmatpush3.bf16.msra.mxu0 %v1167_v42 }
  0x36   : > { %1040 = vmatprep.subr.bf16.mxu0 %v1168_v43 }
  0x39   : > { %1041 = vmatpush3.bf16.msra.mxu0 %v1169_v44 }
  0x3c   : > { %1000 = vmatmul.mubr.msk.bf16.gmra.mxu0 %vm266_vm0, %v234_v29 }
  0x3d   : > { %373 = vmatprep.mubr.bf16.mxu0 %v1296_v2 }
  0x44   : > { %1001 = vmatmul.mubr.msk.bf16.gmra.mxu0 %vm266_vm0, %v235_v32 }
  0x45   : > { %383 = vmatprep.mubr.bf16.mxu0 %v1296_v2 }
  0x4c   : > { %1002 = vmatmul.mubr.msk.bf16.gmra.mxu0 %vm266_vm0, %v236_v35 }
  0x4d   : > { %393 = vmatprep.mubr.bf16.mxu0 %v1296_v2 }
  0x54   : > { %1003 = vmatmul.mubr.msk.bf16.gmra.mxu0 %vm266_vm0, %v237_v38 }
  0xdc   : > { %v325_v51 = vpop.f32.mrf.mxu0 }
  0xdd   : > { %v326_v58 = vadd.f32 %v325_v51, %v1476_v53 }
  0xde   : > { %v327_v54 = vpop.f32.mrf.mxu0 }
  0xdf   : > { %v328_v56 = vadd.f32 %v327_v54, %v1473_v52  ;;  %v404_v1 = vmax.f32 %v326_v58, 0.0 }
  0xe0   : > { %v329_v55 = vpop.f32.mrf.mxu0 }
  0xe1   : > { %v330_v57 = vadd.f32 %v329_v55, %v1476_v53  ;;  %v405_v63 = vmax.f32 %v328_v56, 0.0 }
  0xe2   : > { %v331_v59 = vpop.f32.mrf.mxu0 }
  0xe3   : > { %v332_v60 = vadd.f32 %v331_v59, %v1473_v52  ;;  %v406_v61 = vmax.f32 %v330_v57, 0.0 }
  0xe4   : > { %v335_v62 = vpop.f32.mrf.mxu0 }
  0xe5   : > { %v407_v0 = vmax.f32 %v332_v60, 0.0  ;;  %v436_v4 = vpack.c.bf16 %v406_v61, %v404_v1  ;;  %v336_v8 = vadd.f32 %v335_v62, %v1476_v53 }
  0xe6   : > { %v337_v2 = vpop.f32.mrf.mxu0 }
  0xe7   : > { %v437_v3 = vpack.c.bf16 %v407_v0, %v405_v63  ;;  %v338_v6 = vadd.f32 %v337_v2, %v1473_v52  ;;  %v408_v15 = vmax.f32 %v336_v8, 0.0 }
  0xe8   : > { %v339_v5 = vpop.f32.mrf.mxu0 }
  0xe9   : > { %v340_v7 = vadd.f32 %v339_v5, %v1476_v53  ;;  %584 = vmatprep.mubr.bf16.mxu0 %v437_v3  ;;  %v409_v13 = vmax.f32 %v338_v6, 0.0 }
  0xea   : > { %v341_v9 = vpop.f32.mrf.mxu0  ;;  %585 = vmatmul.mubr.bf16.vlgmr.msra.gmra.mxu0 %v436_v4 }
  0xeb   : > { %v342_v10 = vadd.f32 %v341_v9, %v1473_v52  ;;  %v410_v11 = vmax.f32 %v340_v7, 0.0 }
  0xec   : > { %v345_v12 = vpop.f32.mrf.mxu0 }
  0xed   : > { %v411_v14 = vmax.f32 %v342_v10, 0.0  ;;  %v438_v18 = vpack.c.bf16 %v410_v11, %v408_v15  ;;  %v346_v22 = vadd.f32 %v345_v12, %v1476_v53 }
  0xee   : > { %v347_v16 = vpop.f32.mrf.mxu0 }
  0xef   : > { %v439_v17 = vpack.c.bf16 %v411_v14, %v409_v13  ;;  %v348_v20 = vadd.f32 %v347_v16, %v1473_v52  ;;  %v412_v29 = vmax.f32 %v346_v22, 0.0 }
  0xf0   : > { %v349_v19 = vpop.f32.mrf.mxu0 }
  0xf1   : > { %v350_v21 = vadd.f32 %v349_v19, %v1476_v53  ;;  %592 = vmatprep.mubr.bf16.mxu1 %v439_v17  ;;  %v413_v27 = vmax.f32 %v348_v20, 0.0 }
  0xf2   : > { %v351_v23 = vpop.f32.mrf.mxu0  ;;  %593 = vmatmul.mubr.bf16.vlgmr.msra.gmra.mxu1 %v438_v18 }
  0xf3   : > { %v352_v24 = vadd.f32 %v351_v23, %v1473_v52  ;;  %v414_v25 = vmax.f32 %v350_v21, 0.0 }
  0xf4   : > { %v355_v26 = vpop.f32.mrf.mxu0 }
  0xf5   : > { %v415_v28 = vmax.f32 %v352_v24, 0.0  ;;  %v440_v32 = vpack.c.bf16 %v414_v25, %v412_v29  ;;  %v356_v36 = vadd.f32 %v355_v26, %v1476_v53 }
  0xf6   : > { %v357_v30 = vpop.f32.mrf.mxu0 }
  0xf7   : > { %v441_v31 = vpack.c.bf16 %v415_v28, %v413_v27  ;;  %v358_v34 = vadd.f32 %v357_v30, %v1473_v52  ;;  %v416_v43 = vmax.f32 %v356_v36, 0.0 }
  0xf8   : > { %v359_v33 = vpop.f32.mrf.mxu0 }
  0xf9   : > { %v360_v35 = vadd.f32 %v359_v33, %v1476_v53  ;;  %600 = vmatprep.mubr.bf16.mxu1 %v441_v31  ;;  %v417_v41 = vmax.f32 %v358_v34, 0.0 }
  0xfa   : > { %v361_v37 = vpop.f32.mrf.mxu0  ;;  %601 = vmatmul.mubr.bf16.gmra.mxu1 %v440_v32 }
  0xfb   : > { %v362_v38 = vadd.f32 %v361_v37, %v1473_v52  ;;  %v418_v39 = vmax.f32 %v360_v35, 0.0 }
  0xfc   : > { %v365_v40 = vpop.f32.mrf.mxu0 }
  0xfd   : > { %v419_v42 = vmax.f32 %v362_v38, 0.0  ;;  %v442_v47 = vpack.c.bf16 %v418_v39, %v416_v43  ;;  %v366_v54 = vadd.f32 %v365_v40, %v1476_v53 }
  0xfe   : > { %v367_v44 = vpop.f32.mrf.mxu0 }
  0xff   : > { %v443_v46 = vpack.c.bf16 %v419_v42, %v417_v41  ;;  %v368_v49 = vadd.f32 %v367_v44, %v1473_v52  ;;  %v420_v61 = vmax.f32 %v366_v54, 0.0  ;;  %v228_v41 = vld [vmem:[%s1851_s2 + $0x80] sm:$0x1] }
 0x100   : > { %v369_v48 = vpop.f32.mrf.mxu0  ;;  %v229_v42 = vunpack.c.l.bf16 %v228_v41 }
 0x101   : > { %v370_v51 = vadd.f32 %v369_v48, %v1476_v53  ;;  %608 = vmatprep.mubr.bf16.mxu1 %v443_v46  ;;  %v421_v59 = vmax.f32 %v368_v49, 0.0 }
 0x102   : > { %v371_v55 = vpop.f32.mrf.mxu0  ;;  %609 = vmatmul.mubr.bf16.gmra.mxu1 %v442_v47  ;;  %v1517_v44 = vrot.slane %v229_v42, %v1470_v50 }
 0x103   : > { %v372_v56 = vadd.f32 %v371_v55, %v1473_v52  ;;  %v422_v57 = vmax.f32 %v370_v51, 0.0 }
 0x104   : > { %v375_v58 = vpop.f32.mrf.mxu0 }
 0x105   : > { %v423_v60 = vmax.f32 %v372_v56, 0.0  ;;  %v444_v0 = vpack.c.bf16 %v422_v57, %v420_v61  ;;  %v376_v4 = vadd.f32 %v375_v58, %v1476_v53 }
 0x106   : > { %v377_v62 = vpop.f32.mrf.mxu0 }
 0x107   : > { %v445_v63 = vpack.c.bf16 %v423_v60, %v421_v59  ;;  %v378_v2 = vadd.f32 %v377_v62, %v1473_v52  ;;  %v424_v11 = vmax.f32 %v376_v4, 0.0 }
 0x108   : > { %v379_v1 = vpop.f32.mrf.mxu0 }
 0x109   : > { %v380_v3 = vadd.f32 %v379_v1, %v1476_v53  ;;  %616 = vmatprep.mubr.bf16.mxu1 %v445_v63  ;;  %v425_v9 = vmax.f32 %v378_v2, 0.0 }
 0x10a   : > { %v381_v5 = vpop.f32.mrf.mxu0  ;;  %617 = vmatmul.mubr.bf16.gmra.mxu1 %v444_v0 }
 0x10b   : > { %v382_v6 = vadd.f32 %v381_v5, %v1473_v52  ;;  %v426_v7 = vmax.f32 %v380_v3, 0.0 }
 0x10c   : > { %v385_v8 = vpop.f32.mrf.mxu0 }
 0x10d   : > { %v427_v10 = vmax.f32 %v382_v6, 0.0  ;;  %v446_v14 = vpack.c.bf16 %v426_v7, %v424_v11  ;;  %v386_v18 = vadd.f32 %v385_v8, %v1476_v53 }
 0x10e   : > { %v387_v12 = vpop.f32.mrf.mxu0 }
 0x10f   : > { %v447_v13 = vpack.c.bf16 %v427_v10, %v425_v9  ;;  %v388_v16 = vadd.f32 %v387_v12, %v1473_v52  ;;  %v428_v25 = vmax.f32 %v386_v18, 0.0 }
 0x110   : > { %v389_v15 = vpop.f32.mrf.mxu0 }
 0x111   : > { %v390_v17 = vadd.f32 %v389_v15, %v1476_v53  ;;  %624 = vmatprep.mubr.bf16.mxu1 %v447_v13  ;;  %v429_v23 = vmax.f32 %v388_v16, 0.0 }
 0x112   : > { %v391_v19 = vpop.f32.mrf.mxu0  ;;  %625 = vmatmul.mubr.bf16.gmra.mxu1 %v446_v14 }
 0x113   : > { %v392_v20 = vadd.f32 %v391_v19, %v1473_v52  ;;  %v430_v21 = vmax.f32 %v390_v17, 0.0 }
 0x114   : > { %v395_v22 = vpop.f32.mrf.mxu0 }
 0x115   : > { %v431_v24 = vmax.f32 %v392_v20, 0.0  ;;  %v448_v28 = vpack.c.bf16 %v430_v21, %v428_v25  ;;  %v396_v32 = vadd.f32 %v395_v22, %v1476_v53 }
 0x116   : > { %v397_v26 = vpop.f32.mrf.mxu0 }
 0x117   : > { %v449_v27 = vpack.c.bf16 %v431_v24, %v429_v23  ;;  %v398_v30 = vadd.f32 %v397_v26, %v1473_v52  ;;  %v432_v38 = vmax.f32 %v396_v32, 0.0 }
 0x118   : > { %v399_v29 = vpop.f32.mrf.mxu0 }
 0x119   : > { %v400_v31 = vadd.f32 %v399_v29, %v1476_v53  ;;  %632 = vmatprep.mubr.bf16.mxu1 %v449_v27  ;;  %v433_v36 = vmax.f32 %v398_v30, 0.0  ;;  %v1514_v53 = vand.u32 127, %v238_v45 }
 0x11a   : > { %v401_v33 = vpop.f32.mrf.mxu0  ;;  %633 = vmatmul.mubr.bf16.gmra.mxu1 %v448_v28 }
 0x11b   : > { %v402_v34 = vadd.f32 %v401_v33, %v1473_v52  ;;  %v434_v35 = vmax.f32 %v400_v31, 0.0  ;;  %vm651_vm1 = vcmp.lt.s32.totalorder %v1514_v53, 8  ;;  %vm652_vm2 = vcmp.eq.s32.totalorder %v1514_v53, 8 }
 0x11d   : > { %v435_v37 = vmax.f32 %v402_v34, 0.0  ;;  %v450_v40 = vpack.c.bf16 %v434_v35, %v432_v38 }
 0x11f   : > { %v451_v39 = vpack.c.bf16 %v435_v37, %v433_v36 }
 0x121   : > { %640 = vmatprep.mubr.bf16.mxu1 %v451_v39 }
 0x122   : > { %641 = vmatmul.mubr.bf16.gmra.mxu1 %v450_v40 }
 0x1aa   : > { %v1042_v43 = vpop.f32.mrf.mxu0 }
 0x1ac   : > { %v1043_v52 = vpop.f32.mrf.mxu0 }
 0x1ad   : > { %v1044_v46 = vadd.f32 %v1043_v52, %v1042_v43 }
 0x1ae   : > { %v1045_v47 = vpop.f32.mrf.mxu0 }
 0x1af   : > { %v587_v48 = vadd.f32 %v1044_v46, %v1517_v44 }
 0x1b0   : > { %v1046_v49 = vpop.f32.mrf.mxu0 }
 0x1b1   : > { %v1047_v51 = vadd.f32 %v1046_v49, %v1045_v47  ;;  %v1524_v54 = vsel %vm651_vm1, %v587_v48, -1e+30  ;;  %v1528_v45 = vsel %vm652_vm2, %v587_v48, 0.0 }
 0x1b2   : > { %v1048_v50 = vpop.f32.mrf.mxu1  ;;  %669 = vmax.xlane.f32.xlu0 %v1524_v54 }
 0x1b3   : > { %v590_v55 = vadd.f32 %v1047_v51, %v1517_v44 }
 0x1b4   : > { %v1049_v56 = vpop.f32.mrf.mxu1 }
 0x1b5   : > { %v1050_v57 = vadd.f32 %v1049_v56, %v1048_v50  ;;  %v1534_v58 = vsel %vm651_vm1, %v590_v55, -1e+30  ;;  %v1538_v59 = vsel %vm652_vm2, %v590_v55, 0.0 }
 0x1b6   : > { %v1051_v60 = vpop.f32.mrf.mxu1  ;;  %671 = vmax.xlane.f32.xlu0 %v1534_v58 }
 0x1b7   : > { %v595_v61 = vadd.f32 %v1050_v57, %v1517_v44 }
 0x1b8   : > { %v1052_v62 = vpop.f32.mrf.mxu1 }
 0x1b9   : > { %v1053_v63 = vadd.f32 %v1052_v62, %v1051_v60  ;;  %v1544_v0 = vsel %vm651_vm1, %v595_v61, -1e+30  ;;  %v1548_v1 = vsel %vm652_vm2, %v595_v61, 0.0 }
 0x1ba   : > { %v1054_v2 = vpop.f32.mrf.mxu1  ;;  %673 = vmax.xlane.f32.xlu1 %v1544_v0 }
 0x1bb   : > { %v598_v3 = vadd.f32 %v1053_v63, %v1517_v44 }
 0x1bc   : > { %v1055_v4 = vpop.f32.mrf.mxu1 }
 0x1bd   : > { %v1056_v5 = vadd.f32 %v1055_v4, %v1054_v2  ;;  %v1554_v6 = vsel %vm651_vm1, %v598_v3, -1e+30  ;;  %v1558_v7 = vsel %vm652_vm2, %v598_v3, 0.0 }
 0x1be   : > { %v1057_v8 = vpop.f32.mrf.mxu1  ;;  %675 = vmax.xlane.f32.xlu1 %v1554_v6 }
 0x1bf   : > { %v603_v9 = vadd.f32 %v1056_v5, %v1517_v44 }
 0x1c0   : > { %v1058_v10 = vpop.f32.mrf.mxu1 }
 0x1c1   : > { %v1059_v11 = vadd.f32 %v1058_v10, %v1057_v8  ;;  %v1564_v12 = vsel %vm651_vm1, %v603_v9, -1e+30  ;;  %v1568_v13 = vsel %vm652_vm2, %v603_v9, 0.0 }
 0x1c2   : > { %v1060_v14 = vpop.f32.mrf.mxu1  ;;  %677 = vmax.xlane.f32.xlu0 %v1564_v12 }
 0x1c3   : > { %v606_v15 = vadd.f32 %v1059_v11, %v1517_v44 }
 0x1c4   : > { %v1061_v16 = vpop.f32.mrf.mxu1 }
 0x1c5   : > { %v1062_v17 = vadd.f32 %v1061_v16, %v1060_v14  ;;  %v1574_v18 = vsel %vm651_vm1, %v606_v15, -1e+30  ;;  %v1578_v19 = vsel %vm652_vm2, %v606_v15, 0.0 }
 0x1c6   : > { %v1063_v20 = vpop.f32.mrf.mxu1  ;;  %679 = vmax.xlane.f32.xlu1 %v1574_v18 }
 0x1c7   : > { %v611_v21 = vadd.f32 %v1062_v17, %v1517_v44 }
 0x1c8   : > { %v1064_v22 = vpop.f32.mrf.mxu1 }
 0x1c9   : > { %v1065_v23 = vadd.f32 %v1064_v22, %v1063_v20  ;;  %v1584_v24 = vsel %vm651_vm1, %v611_v21, -1e+30  ;;  %v1588_v25 = vsel %vm652_vm2, %v611_v21, 0.0 }
 0x1ca   : > { %v1066_v26 = vpop.f32.mrf.mxu1  ;;  %681 = vmax.xlane.f32.xlu0 %v1584_v24 }
 0x1cb   : > { %v614_v27 = vadd.f32 %v1065_v23, %v1517_v44 }
 0x1cc   : > { %v1067_v28 = vpop.f32.mrf.mxu1 }
 0x1cd   : > { %v1068_v29 = vadd.f32 %v1067_v28, %v1066_v26  ;;  %v1594_v30 = vsel %vm651_vm1, %v614_v27, -1e+30  ;;  %v1598_v31 = vsel %vm652_vm2, %v614_v27, 0.0 }
 0x1ce   : > { %v1069_v32 = vpop.f32.mrf.mxu1  ;;  %683 = vmax.xlane.f32.xlu1 %v1594_v30 }
 0x1cf   : > { %v619_v33 = vadd.f32 %v1068_v29, %v1517_v44 }
 0x1d0   : > { %v1070_v34 = vpop.f32.mrf.mxu1 }
 0x1d1   : > { %v1071_v35 = vadd.f32 %v1070_v34, %v1069_v32  ;;  %v1604_v36 = vsel %vm651_vm1, %v619_v33, -1e+30  ;;  %v1608_v37 = vsel %vm652_vm2, %v619_v33, 0.0 }
 0x1d2   : > { %v1072_v38 = vpop.f32.mrf.mxu1  ;;  %685 = vmax.xlane.f32.xlu0 %v1604_v36 }
 0x1d3   : > { %v622_v39 = vadd.f32 %v1071_v35, %v1517_v44 }
 0x1d4   : > { %v1073_v40 = vpop.f32.mrf.mxu1 }
 0x1d5   : > { %v1074_v41 = vadd.f32 %v1073_v40, %v1072_v38  ;;  %v1614_v42 = vsel %vm651_vm1, %v622_v39, -1e+30  ;;  %v1618_v43 = vsel %vm652_vm2, %v622_v39, 0.0 }
 0x1d6   : > { %v1075_v52 = vpop.f32.mrf.mxu1  ;;  %687 = vmax.xlane.f32.xlu1 %v1614_v42 }
 0x1d7   : > { %v627_v46 = vadd.f32 %v1074_v41, %v1517_v44 }
 0x1d8   : > { %v1076_v47 = vpop.f32.mrf.mxu1 }
 0x1d9   : > { %v1077_v48 = vadd.f32 %v1076_v47, %v1075_v52  ;;  %v1624_v49 = vsel %vm651_vm1, %v627_v46, -1e+30  ;;  %v1628_v51 = vsel %vm652_vm2, %v627_v46, 0.0 }
 0x1da   : > { %v1078_v50 = vpop.f32.mrf.mxu1  ;;  %689 = vmax.xlane.f32.xlu0 %v1624_v49 }
 0x1db   : > { %v630_v55 = vadd.f32 %v1077_v48, %v1517_v44 }
 0x1dc   : > { %v1079_v56 = vpop.f32.mrf.mxu1 }
 0x1dd   : > { %v1080_v57 = vadd.f32 %v1079_v56, %v1078_v50  ;;  %v1634_v60 = vsel %vm651_vm1, %v630_v55, -1e+30  ;;  %v1638_v61 = vsel %vm652_vm2, %v630_v55, 0.0 }
 0x1de   : > { %v1081_v62 = vpop.f32.mrf.mxu1  ;;  %691 = vmax.xlane.f32.xlu1 %v1634_v60 }
 0x1df   : > { %v635_v63 = vadd.f32 %v1080_v57, %v1517_v44 }
 0x1e0   : > { %v1082_v2 = vpop.f32.mrf.mxu1 }
 0x1e1   : > { %v1083_v3 = vadd.f32 %v1082_v2, %v1081_v62  ;;  %v1644_v4 = vsel %vm651_vm1, %v635_v63, -1e+30  ;;  %v1648_v5 = vsel %vm652_vm2, %v635_v63, 0.0 }
 0x1e2   : > { %v1084_v8 = vpop.f32.mrf.mxu1  ;;  %693 = vmax.xlane.f32.xlu0 %v1644_v4 }
 0x1e3   : > { %v638_v9 = vadd.f32 %v1083_v3, %v1517_v44 }
 0x1e4   : > { %v1085_v10 = vpop.f32.mrf.mxu1 }
 0x1e5   : > { %v1086_v11 = vadd.f32 %v1085_v10, %v1084_v8  ;;  %v1654_v14 = vsel %vm651_vm1, %v638_v9, -1e+30  ;;  %v1658_v15 = vsel %vm652_vm2, %v638_v9, 0.0 }
 0x1e6   : > { %v1087_v16 = vpop.f32.mrf.mxu1  ;;  %695 = vmax.xlane.f32.xlu1 %v1654_v14 }
 0x1e7   : > { %v643_v17 = vadd.f32 %v1086_v11, %v1517_v44 }
 0x1e8   : > { %v1088_v20 = vpop.f32.mrf.mxu1 }
 0x1e9   : > { %v1089_v21 = vadd.f32 %v1088_v20, %v1087_v16  ;;  %v1664_v22 = vsel %vm651_vm1, %v643_v17, -1e+30  ;;  %v1668_v23 = vsel %vm652_vm2, %v643_v17, 0.0 }
 0x1ea   : > { %697 = vmax.xlane.f32.xlu0 %v1664_v22 }
 0x1eb   : > { %v646_v26 = vadd.f32 %v1089_v21, %v1517_v44 }
 0x1ed   : > { %v1674_v27 = vsel %vm651_vm1, %v646_v26, -1e+30  ;;  %v1678_v28 = vsel %vm652_vm2, %v646_v26, 0.0 }
 0x1ee   : > { %699 = vmax.xlane.f32.xlu1 %v1674_v27 }
 0x23b   : > { %v670_v29 = vpop.xlane.xlu0 %669 }
 0x23c   : > { %v701_v32 = vsub.f32 %v1524_v54, %v670_v29 }
 0x23e   : > { %v717_v33 = vmul.f32 1.442695, %v701_v32 }
 0x23f   : > { %v672_v34 = vpop.xlane.xlu0 %671 }
 0x240   : > { %1170 = vpow2.f32 %v717_v33  ;;  %v702_v35 = vsub.f32 %v1534_v58, %v672_v34 }
 0x242   : > { %v719_v38 = vmul.f32 1.442695, %v702_v35 }
 0x243   : > { %v674_v44 = vpop.xlane.xlu1 %673 }
 0x244   : > { %1172 = vpow2.f32 %v719_v38  ;;  %v703_v39 = vsub.f32 %v1544_v0, %v674_v44 }
 0x246   : > { %v721_v40 = vmul.f32 1.442695, %v703_v39 }
 0x247   : > { %v676_v41 = vpop.xlane.xlu1 %675 }
 0x248   : > { %1174 = vpow2.f32 %v721_v40  ;;  %v704_v53 = vsub.f32 %v1554_v6, %v676_v41 }
 0x24a   : > { %v723_v52 = vmul.f32 1.442695, %v704_v53 }
 0x24b   : > { %v678_v46 = vpop.xlane.xlu0 %677 }
 0x24c   : > { %1176 = vpow2.f32 %v723_v52  ;;  %v705_v54 = vsub.f32 %v1564_v12, %v678_v46 }
 0x24d   : > { %v1686_v47 = vpop.eup %1170 }
 0x24e   : > { %v725_v48 = vmul.f32 1.442695, %v705_v54  ;;  %749 = vadd.xlane.f32.xlu0 %v1686_v47 }
 0x24f   : > { %v680_v58 = vpop.xlane.xlu1 %679 }
 0x250   : > { %1178 = vpow2.f32 %v725_v48  ;;  %v706_v50 = vsub.f32 %v1574_v18, %v680_v58 }
 0x251   : > { %v1690_v0 = vpop.eup %1172 }
 0x252   : > { %v727_v55 = vmul.f32 1.442695, %v706_v50  ;;  %751 = vadd.xlane.f32.xlu1 %v1690_v0 }
 0x253   : > { %v682_v6 = vpop.xlane.xlu0 %681 }
 0x254   : > { %1180 = vpow2.f32 %v727_v55  ;;  %v707_v56 = vsub.f32 %v1584_v24, %v682_v6 }
 0x255   : > { %v1694_v57 = vpop.eup %1174 }
 0x256   : > { %v729_v12 = vmul.f32 1.442695, %v707_v56  ;;  %753 = vadd.xlane.f32.xlu0 %v1694_v57 }
 0x257   : > { %v684_v62 = vpop.xlane.xlu1 %683 }
 0x258   : > { %1182 = vpow2.f32 %v729_v12  ;;  %v708_v63 = vsub.f32 %v1594_v30, %v684_v62 }
 0x259   : > { %v1698_v2 = vpop.eup %1176 }
 0x25a   : > { %v731_v18 = vmul.f32 1.442695, %v708_v63  ;;  %755 = vadd.xlane.f32.xlu1 %v1698_v2 }
 0x25b   : > { %v686_v3 = vpop.xlane.xlu0 %685 }
 0x25c   : > { %1184 = vpow2.f32 %v731_v18  ;;  %v709_v8 = vsub.f32 %v1604_v36, %v686_v3 }
 0x25d   : > { %v1702_v9 = vpop.eup %1178 }
 0x25e   : > { %v733_v24 = vmul.f32 1.442695, %v709_v8  ;;  %757 = vadd.xlane.f32.xlu0 %v1702_v9 }
 0x25f   : > { %v688_v10 = vpop.xlane.xlu1 %687 }
 0x260   : > { %1186 = vpow2.f32 %v733_v24  ;;  %v710_v11 = vsub.f32 %v1614_v42, %v688_v10 }
 0x261   : > { %v1706_v16 = vpop.eup %1180 }
 0x262   : > { %v735_v30 = vmul.f32 1.442695, %v710_v11  ;;  %759 = vadd.xlane.f32.xlu1 %v1706_v16 }
 0x263   : > { %v690_v17 = vpop.xlane.xlu0 %689 }
 0x264   : > { %1188 = vpow2.f32 %v735_v30  ;;  %v711_v20 = vsub.f32 %v1624_v49, %v690_v17 }
 0x265   : > { %v1710_v21 = vpop.eup %1182 }
 0x266   : > { %v737_v36 = vmul.f32 1.442695, %v711_v20  ;;  %761 = vadd.xlane.f32.xlu0 %v1710_v21 }
 0x267   : > { %v692_v26 = vpop.xlane.xlu1 %691 }
 0x268   : > { %1190 = vpow2.f32 %v737_v36  ;;  %v712_v29 = vsub.f32 %v1634_v60, %v692_v26 }
 0x269   : > { %v1714_v32 = vpop.eup %1184 }
 0x26a   : > { %v739_v42 = vmul.f32 1.442695, %v712_v29  ;;  %763 = vadd.xlane.f32.xlu1 %v1714_v32 }
 0x26b   : > { %v694_v33 = vpop.xlane.xlu0 %693 }
 0x26c   : > { %1192 = vpow2.f32 %v739_v42  ;;  %v713_v34 = vsub.f32 %v1644_v4, %v694_v33 }
 0x26d   : > { %v1718_v35 = vpop.eup %1186 }
 0x26e   : > { %v741_v49 = vmul.f32 1.442695, %v713_v34  ;;  %765 = vadd.xlane.f32.xlu0 %v1718_v35 }
 0x26f   : > { %v696_v38 = vpop.xlane.xlu1 %695 }
 0x270   : > { %1194 = vpow2.f32 %v741_v49  ;;  %v714_v44 = vsub.f32 %v1654_v14, %v696_v38 }
 0x271   : > { %v1722_v39 = vpop.eup %1188 }
 0x272   : > { %v743_v60 = vmul.f32 1.442695, %v714_v44  ;;  %767 = vadd.xlane.f32.xlu1 %v1722_v39 }
 0x273   : > { %v698_v40 = vpop.xlane.xlu0 %697 }
 0x274   : > { %1196 = vpow2.f32 %v743_v60  ;;  %v715_v41 = vsub.f32 %v1664_v22, %v698_v40 }
 0x275   : > { %v1726_v53 = vpop.eup %1190 }
 0x276   : > { %v745_v4 = vmul.f32 1.442695, %v715_v41  ;;  %769 = vadd.xlane.f32.xlu0 %v1726_v53 }
 0x277   : > { %v700_v52 = vpop.xlane.xlu1 %699 }
 0x278   : > { %1198 = vpow2.f32 %v745_v4  ;;  %v716_v46 = vsub.f32 %v1674_v27, %v700_v52 }
 0x279   : > { %v1730_v54 = vpop.eup %1192 }
 0x27a   : > { %v747_v14 = vmul.f32 1.442695, %v716_v46  ;;  %771 = vadd.xlane.f32.xlu1 %v1730_v54 }
 0x27c   : > { %1200 = vpow2.f32 %v747_v14 }
 0x27d   : > { %v1733_v48 = vpop.eup %1194 }
 0x27e   : > { %773 = vadd.xlane.f32.xlu0 %v1733_v48 }
 0x281   : > { %v1736_v22 = vpop.eup %1196 }
 0x282   : > { %775 = vadd.xlane.f32.xlu1 %v1736_v22 }
 0x285   : > { %v1739_v58 = vpop.eup %1198 }
 0x286   : > { %777 = vadd.xlane.f32.xlu0 %v1739_v58 }
 0x289   : > { %v1742_v27 = vpop.eup %1200 }
 0x28a   : > { %779 = vadd.xlane.f32.xlu1 %v1742_v27 }
 0x2d7   : > { %v750_v50 = vpop.xlane.xlu0 %749 }
 0x2d8   : > { %1202 = vrcp.f32 %v750_v50 }
 0x2db   : > { %v752_v55 = vpop.xlane.xlu1 %751 }
 0x2dc   : > { %1204 = vrcp.f32 %v752_v55 }
 0x2df   : > { %v754_v6 = vpop.xlane.xlu0 %753 }
 0x2e0   : > { %1206 = vrcp.f32 %v754_v6 }
 0x2e3   : > { %v756_v56 = vpop.xlane.xlu1 %755 }
 0x2e4   : > { %1208 = vrcp.f32 %v756_v56 }
 0x2e5   : > { %v1203_v12 = vpop.eup %1202 }
 0x2e6   : > { %v797_v62 = vmul.f32 %v1203_v12, %v750_v50 }
 0x2e7   : > { %v758_v63 = vpop.xlane.xlu0 %757 }
 0x2e8   : > { %v813_v18 = vsub.f32 2.0, %v797_v62  ;;  %1210 = vrcp.f32 %v758_v63 }
 0x2e9   : > { %v1205_v3 = vpop.eup %1204 }
 0x2ea   : > { %v829_v8 = vmul.f32 %v1203_v12, %v813_v18  ;;  %v798_v24 = vmul.f32 %v1205_v3, %v752_v55 }
 0x2eb   : > { %v760_v10 = vpop.xlane.xlu1 %759 }
 0x2ec   : > { %v845_v11 = vmul.f32 %v1686_v47, %v829_v8  ;;  %v814_v30 = vsub.f32 2.0, %v798_v24  ;;  %1212 = vrcp.f32 %v760_v10 }
 0x2ed   : > { %v1207_v17 = vpop.eup %1206 }
 0x2ee   : > { %v877_v20 = vadd.f32 %v1528_v45, %v845_v11  ;;  %v830_v36 = vmul.f32 %v1205_v3, %v814_v30  ;;  %v799_v26 = vmul.f32 %v1207_v17, %v754_v6 }
 0x2ef   : > { %v762_v29 = vpop.xlane.xlu0 %761 }
 0x2f0   : > { %893 = vst [vmem:[%s1750_s17] sm:$0xff] %v877_v20  ;;  %v846_v42 = vmul.f32 %v1690_v0, %v830_v36  ;;  %v815_v33 = vsub.f32 2.0, %v799_v26  ;;  %1214 = vrcp.f32 %v762_v29 }
 0x2f1   : > { %v1209_v34 = vpop.eup %1208 }
 0x2f2   : > { %v878_v47 = vadd.f32 %v1538_v59, %v846_v42  ;;  %v831_v49 = vmul.f32 %v1207_v17, %v815_v33  ;;  %v800_v38 = vmul.f32 %v1209_v34, %v756_v56 }
 0x2f3   : > { %v764_v44 = vpop.xlane.xlu1 %763 }
 0x2f4   : > { %894 = vst [vmem:[%s1750_s17 + $0x8] sm:$0xff] %v878_v47  ;;  %v847_v45 = vmul.f32 %v1694_v57, %v831_v49  ;;  %v816_v60 = vsub.f32 2.0, %v800_v38  ;;  %1216 = vrcp.f32 %v764_v44 }
 0x2f5   : > { %v1211_v40 = vpop.eup %1210 }
 0x2f6   : > { %v879_v41 = vadd.f32 %v1548_v1, %v847_v45  ;;  %v832_v4 = vmul.f32 %v1209_v34, %v816_v60  ;;  %v801_v0 = vmul.f32 %v1211_v40, %v758_v63 }
 0x2f7   : > { %v766_v52 = vpop.xlane.xlu0 %765 }
 0x2f8   : > { %895 = vst [vmem:[%s1750_s17 + $0x10] sm:$0xff] %v879_v41  ;;  %v848_v46 = vmul.f32 %v1698_v2, %v832_v4  ;;  %v817_v14 = vsub.f32 2.0, %v801_v0  ;;  %1218 = vrcp.f32 %v766_v52 }
 0x2f9   : > { %v1213_v59 = vpop.eup %1212 }
 0x2fa   : > { %v880_v50 = vadd.f32 %v1558_v7, %v848_v46  ;;  %v833_v55 = vmul.f32 %v1211_v40, %v817_v14  ;;  %v802_v57 = vmul.f32 %v1213_v59, %v760_v10 }
 0x2fb   : > { %v768_v6 = vpop.xlane.xlu1 %767 }
 0x2fc   : > { %896 = vst [vmem:[%s1750_s17 + $0x18] sm:$0xff] %v880_v50  ;;  %v849_v56 = vmul.f32 %v1702_v9, %v833_v55  ;;  %v818_v12 = vsub.f32 2.0, %v802_v57  ;;  %1220 = vrcp.f32 %v768_v6 }
 0x2fd   : > { %v1215_v1 = vpop.eup %1214 }
 0x2fe   : > { %v881_v62 = vadd.f32 %v1568_v13, %v849_v56  ;;  %v834_v63 = vmul.f32 %v1213_v59, %v818_v12  ;;  %v803_v2 = vmul.f32 %v1215_v1, %v762_v29 }
 0x2ff   : > { %v770_v18 = vpop.xlane.xlu0 %769 }
 0x300   : > { %897 = vst [vmem:[%s1750_s17 + $0x20] sm:$0xff] %v881_v62  ;;  %v850_v3 = vmul.f32 %v1706_v16, %v834_v63  ;;  %v819_v8 = vsub.f32 2.0, %v803_v2  ;;  %1222 = vrcp.f32 %v770_v18 }
 0x301   : > { %v1217_v7 = vpop.eup %1216 }
 0x302   : > { %v882_v24 = vadd.f32 %v1578_v19, %v850_v3  ;;  %v835_v10 = vmul.f32 %v1215_v1, %v819_v8  ;;  %v804_v9 = vmul.f32 %v1217_v7, %v764_v44 }
 0x303   : > { %v772_v11 = vpop.xlane.xlu1 %771 }
 0x304   : > { %898 = vst [vmem:[%s1750_s17 + $0x28] sm:$0xff] %v882_v24  ;;  %v851_v30 = vmul.f32 %v1710_v21, %v835_v10  ;;  %v820_v17 = vsub.f32 2.0, %v804_v9  ;;  %1224 = vrcp.f32 %v772_v11 }
 0x305   : > { %v1219_v13 = vpop.eup %1218 }
 0x306   : > { %v883_v20 = vadd.f32 %v1588_v25, %v851_v30  ;;  %v836_v36 = vmul.f32 %v1217_v7, %v820_v17  ;;  %v805_v16 = vmul.f32 %v1219_v13, %v766_v52 }
 0x307   : > { %v774_v26 = vpop.xlane.xlu0 %773 }
 0x308   : > { %899 = vst [vmem:[%s1750_s17 + $0x30] sm:$0xff] %v883_v20  ;;  %v852_v29 = vmul.f32 %v1714_v32, %v836_v36  ;;  %v821_v42 = vsub.f32 2.0, %v805_v16  ;;  %1226 = vrcp.f32 %v774_v26 }
 0x309   : > { %v1221_v19 = vpop.eup %1220 }
 0x30a   : > { %v884_v33 = vadd.f32 %v1598_v31, %v852_v29  ;;  %v837_v34 = vmul.f32 %v1219_v13, %v821_v42  ;;  %v806_v21 = vmul.f32 %v1221_v19, %v768_v6 }
 0x30b   : > { %v776_v47 = vpop.xlane.xlu1 %775 }
 0x30c   : > { %900 = vst [vmem:[%s1750_s17 + $0x38] sm:$0xff] %v884_v33  ;;  %v853_v49 = vmul.f32 %v1718_v35, %v837_v34  ;;  %v822_v38 = vsub.f32 2.0, %v806_v21  ;;  %1228 = vrcp.f32 %v776_v47 }
 0x30d   : > { %v1223_v25 = vpop.eup %1222 }
 0x30e   : > { %v885_v44 = vadd.f32 %v1608_v37, %v853_v49  ;;  %v838_v45 = vmul.f32 %v1221_v19, %v822_v38  ;;  %v807_v32 = vmul.f32 %v1223_v25, %v770_v18 }
 0x30f   : > { %v778_v60 = vpop.xlane.xlu0 %777 }
 0x310   : > { %901 = vst [vmem:[%s1750_s17 + $0x40] sm:$0xff] %v885_v44  ;;  %v854_v40 = vmul.f32 %v1722_v39, %v838_v45  ;;  %v823_v31 = vsub.f32 2.0, %v807_v32  ;;  %1230 = vrcp.f32 %v778_v60 }
 0x311   : > { %v1225_v41 = vpop.eup %1224 }
 0x312   : > { %v886_v4 = vadd.f32 %v1618_v43, %v854_v40  ;;  %v839_v0 = vmul.f32 %v1223_v25, %v823_v31  ;;  %v808_v35 = vmul.f32 %v1225_v41, %v772_v11 }
 0x313   : > { %v780_v52 = vpop.xlane.xlu1 %779 }
 0x314   : > { %902 = vst [vmem:[%s1750_s17 + $0x48] sm:$0xff] %v886_v4  ;;  %v855_v46 = vmul.f32 %v1726_v53, %v839_v0  ;;  %v824_v37 = vsub.f32 2.0, %v808_v35  ;;  %1232 = vrcp.f32 %v780_v52 }
 0x315   : > { %v1227_v14 = vpop.eup %1226 }
 0x316   : > { %v887_v59 = vadd.f32 %v1628_v51, %v855_v46  ;;  %v840_v50 = vmul.f32 %v1225_v41, %v824_v37  ;;  %v809_v39 = vmul.f32 %v1227_v14, %v774_v26 }
 0x318   : > { %903 = vst [vmem:[%s1750_s17 + $0x50] sm:$0xff] %v887_v59  ;;  %v856_v55 = vmul.f32 %v1730_v54, %v840_v50  ;;  %v825_v57 = vsub.f32 2.0, %v809_v39 }
 0x319   : > { %v1229_v43 = vpop.eup %1228 }
 0x31a   : > { %v888_v6 = vadd.f32 %v1638_v61, %v856_v55  ;;  %v841_v56 = vmul.f32 %v1227_v14, %v825_v57  ;;  %v810_v12 = vmul.f32 %v1229_v43, %v776_v47 }
 0x31c   : > { %904 = vst [vmem:[%s1750_s17 + $0x58] sm:$0xff] %v888_v6  ;;  %v857_v53 = vmul.f32 %v1733_v48, %v841_v56  ;;  %v826_v1 = vsub.f32 2.0, %v810_v12 }
 0x31d   : > { %v1231_v62 = vpop.eup %1230 }
 0x31e   : > { %v889_v51 = vadd.f32 %v1648_v5, %v857_v53  ;;  %v842_v63 = vmul.f32 %v1229_v43, %v826_v1  ;;  %v811_v2 = vmul.f32 %v1231_v62, %v778_v60 }
 0x320   : > { %905 = vst [vmem:[%s1750_s17 + $0x60] sm:$0xff] %v889_v51  ;;  %v858_v54 = vmul.f32 %v1736_v22, %v842_v63  ;;  %v827_v18 = vsub.f32 2.0, %v811_v2 }
 0x321   : > { %v1233_v61 = vpop.eup %1232 }
 0x322   : > { %v890_v3 = vadd.f32 %v1658_v15, %v858_v54  ;;  %v843_v8 = vmul.f32 %v1231_v62, %v827_v18  ;;  %v812_v48 = vmul.f32 %v1233_v61, %v780_v52 }
 0x324   : > { %906 = vst [vmem:[%s1750_s17 + $0x68] sm:$0xff] %v890_v3  ;;  %v859_v7 = vmul.f32 %v1739_v58, %v843_v8  ;;  %v828_v5 = vsub.f32 2.0, %v812_v48 }
 0x326   : > { %v891_v24 = vadd.f32 %v1668_v23, %v859_v7  ;;  %v844_v10 = vmul.f32 %v1233_v61, %v828_v5 }
 0x328   : > { %907 = vst [vmem:[%s1750_s17 + $0x70] sm:$0xff] %v891_v24  ;;  %v860_v22 = vmul.f32 %v1742_v27, %v844_v10 }
 0x32a   : > { %v892_v15 = vadd.f32 %v1678_v28, %v860_v22 }
 0x32c   : > { %908 = vst [vmem:[%s1750_s17 + $0x78] sm:$0xff] %v892_v15 }
 0x32d   : > { %1247 = shalt.err (!%p1244_p3)
}
 0x32e   : > { %s1248_s4 = scalar_lea.hbm %s1801_s27, 2048  ;;  %s1252_s7 = scalar_lea.hbm %s1852_s3, 4096 }
 0x32f   : > { %p1249_p4 = scmp.ne.s32.totalorder %s1801_s27, %s1248_s4  ;;  %p1253_p9 = scmp.lt.s32.totalorder %s1801_s27, %s1852_s3 }
 0x330   : > { %p1254_p10 = scmp.lt.s32.totalorder %s1252_s7, %s1248_s4 }
 0x331   : > { %p1250_p7 = pnand %p1249_p4, %p1358_p5 }
 0x332   : > { %p1255_p11 = por %p1254_p10, %p1253_p9 }
 0x333   : > { %p1251_p8 = pneg %p1250_p7 }
 0x335   : > { %p1256_p12 = pnand %p1255_p11, %p1251_p8 }
 0x337   : > { %1259 = shalt.err (!%p1256_p12)
}
 0x338   : > { %s1298_s10 = smov 128   ;;  %s1299_s11 = smov 8  }
 0x339   : > { %1106 = dma.vmem_to_hbm [thread:$0]  (%p1358_p5), %s1803_s20, 2048, %s1801_s27, %s1809_s24, %s1298_s10, %s1298_s10, %s1299_s11  }
 0x33a PF: > { %p1112_p13 = scmp.ge.s32.totalorder %s1294_s15, 2  ;;  %s938_s17 = sand.u32 1, %s1282_s12  }
 0x33b   : > { %s939_s19 = scalar_lea.sflag [#allocation3], %s938_s17 }
 0x33c   : > { %p1109_p0 = pnand %p1112_p13, %p1362_p6 }
 0x33e   : > { %p1110_p1 = pneg %p1109_p0 }
 0x340   : > { %1277 = dma.done.wait (%p1110_p1), %s939_s19, 2048  }
 0x341   : > { %1279 = vsyncadd (%p1110_p1), %s939_s19, 4294965248  ;;  %p13_p2 = scmp.ge.s32.totalorder %s1345_s18, 4   ;;  %s1855_s12 = smov %s1286_s13 }
 0x342   : > { %s1856_s13 = smov %s1290_s14  ;;  %s1857_s14 = smov %s1356_s21 }
 0x343   : > { %s1858_s15 = smov %s1345_s18  ;;  %15 = sbr.rel (!%p13_p2) target bundleno = 3 (0x3), region = 67 }
 0x348   :  { %944 = vsyncpa [#allocation3], 1 }
 0x349   :  { %946 = vsyncpa [#allocation3 + $0x1], 1 }

</bundles_post_ra>
